<compile_context>
chip_gen: v7x
topology: tpu7x:2x2x1
jax: 0.10.0
libtpu: 0.0.40
codegen_flags: <defaults>
</compile_context>

<pallas_src>
import jax
import jax.numpy as jnp
from jax.experimental import pallas as pl
from jax.experimental.pallas import tpu as pltpu  # noqa: F401  (no grid / specs needed at these sizes)

# ---------------- problem sizes (small, synthetic) ----------------
B = 2          # batch
C_IN = 4       # input channels
H = W = 16     # spatial
HW = H * W
K = 8          # num segmentation / classification classes
N_MODELS = 3   # ensemble size
_SMALL_LANES = 128   # lane-dense width of the packed small output


def _fma_dot(w, v):
    """[K, C] x [C, N] -> [K, N] as C unrolled VPU multiply-adds.

    Contraction depth C_IN=4 would use <2% of the MXU; doing it on the VPU
    avoids the MXU push + result-FIFO round trip in a latency-bound kernel.
    """
    acc = w[:, 0:1] * v[0:1, :]
    for c in range(1, w.shape[1]):
        acc = acc + w[:, c:c + 1] * v[c:c + 1, :]
    return acc


# ---------------- Pallas kernel ----------------
def ensemble_kernel(x_ref, mask_ref, wpack_ref, seg_ref, small_ref):
    # x_ref    : (B*C_IN, HW) f32   contiguous NCHW reshape (batch-major rows)
    # mask_ref : (B, HW)      f32
    # wpack_ref: (N_MODELS, 2K, C_IN+1)  rows 0:K seg head, rows K:2K cls head,
    #                                    col C_IN holds the bias
    # seg_ref  : (B*K, HW)    f32   ensembled seg logits (lane dense)
    # small_ref: (K, 128)     f32   cols 0:B = cls [K,B], cols B:2B = pred (f32)
    n_models, two_k, cin_p1 = wpack_ref.shape
    k = two_k // 2
    c_in = cin_p1 - 1
    b_sz = mask_ref.shape[0]
    hw = x_ref.shape[1]

    # ---- fold the ensemble mean into the (linear) head weights: a few tiny
    #      VPU adds replace N_MODELS separate head applications.
    wp = wpack_ref[0]
    for mi in range(1, n_models):
        wp = wp + wpack_ref[mi]
    wp = wp * (1.0 / n_models)                       # [2K, C_IN+1]
    wseg, bseg = wp[0:k, 0:c_in], wp[0:k, c_in:c_in + 1]        # [K,C_IN], [K,1]
    wcls, bcls = wp[k:2 * k, 0:c_in], wp[k:2 * k, c_in:c_in + 1]

    # ---- seg logits per batch block (rows b*K:(b+1)*K of the output slab)
    #      plus the per-batch spatial reductions that feed cls / logits_cls.
    xs_cols, ms_cols = [], []
    for b in range(b_sz):                            # static, unrolled (B=2)
        xb = x_ref[b * c_in:(b + 1) * c_in, :]       # [C_IN, HW]
        seg_ref[b * k:(b + 1) * k, :] = _fma_dot(wseg, xb) + bseg
        xs_cols.append(jnp.sum(xb, axis=1, keepdims=True))              # [C_IN,1]
        ms_cols.append(jnp.sum(mask_ref[b:b + 1, :], axis=1, keepdims=True))  # [1,1]

    xsum = jnp.concatenate(xs_cols, axis=1)          # [C_IN, B]
    msum = jnp.concatenate(ms_cols, axis=1)          # [1, B]

    # ---- cls logits and masked logits_cls via reduce-then-matmul:
    #        cls        = wcls_bar @ mean_hw(x) + bcls_bar
    #        logits_cls = (wseg_bar @ sum_hw(x) + HW*bseg_bar) / (mask_sum + 1)
    #      (divides kept exact — argmax parity with the reference)
    cls_kb = _fma_dot(wcls, xsum) * (1.0 / hw) + bcls            # [K, B]
    lc_kb = (_fma_dot(wseg, xsum) + hw * bseg) / (msum + 1.0)    # [K, B]

    # first-occurrence argmax over the class (sublane) axis, per batch column
    row_idx = jax.lax.broadcasted_iota(jnp.int32, (k, b_sz), 0)
    maxv = jnp.max(lc_kb, axis=0, keepdims=True)                 # [1, B]
    pred = jnp.min(jnp.where(lc_kb == maxv, row_idx, k),
                   axis=0, keepdims=True)                        # [1, B] int32

    # ---- single packed, lane-dense small output (one write-back DMA):
    #      full-slab unmasked zero store, then the tiny VMEM sub-stores.
    small_ref[...] = jnp.zeros(small_ref.shape, jnp.float32)
    small_ref[:, 0:b_sz] = cls_kb
    small_ref[:, b_sz:2 * b_sz] = jnp.broadcast_to(
        pred.astype(jnp.float32), (k, b_sz))


# ---------------- weight packing (done ONCE, outside the hot path) ----------------
def pack_weights(w_seg, b_seg, w_cls, b_cls):
    """Pack per-model head params into one operand [N_MODELS, 2K, C_IN+1]."""
    seg = jnp.concatenate([w_seg, b_seg], axis=2)    # [M, K, C_IN+1]
    cls = jnp.concatenate([w_cls, b_cls], axis=2)    # [M, K, C_IN+1]
    return jnp.concatenate([seg, cls], axis=1)       # [M, 2K, C_IN+1]


# ---------------- wrapper (jitted: reshapes + tiny slices fuse with the call) ----
@jax.jit
def ensemble_forward(x_nchw, mask_nchw, wpack):
    b, c, h, w = x_nchw.shape
    hw = h * w
    k = wpack.shape[1] // 2

    # contiguous reshapes only — no wrapper-side transposes
    x = x_nchw.astype(jnp.float32).reshape(b * c, hw)
    mask = mask_nchw.astype(jnp.float32).reshape(b, hw)

    seg_out, small = pl.pallas_call(
        ensemble_kernel,
        out_shape=(
            jax.ShapeDtypeStruct((b * k, hw), jnp.float32),
            jax.ShapeDtypeStruct((k, _SMALL_LANES), jnp.float32),
        ),
    )(x, mask, wpack)

    mask_logits_ensemble = seg_out.reshape(b, k, h, w)      # contiguous reshape
    logits_ensemble = small[:, :b].T                        # [B, K] (tiny, fused)
    pred_cls_ensemble = small[0, b:2 * b].astype(jnp.int32) # [B]
    return mask_logits_ensemble, logits_ensemble, pred_cls_ensemble


# ---------------- pure-JAX reference (mirrors the torch forward) ----------------
def reference(x_nchw, mask_nchw, w_seg, b_seg, w_cls, b_cls):
    seg_list, cls_list = [], []
    for mi in range(w_seg.shape[0]):
        seg = jnp.einsum('kc,bchw->bkhw', w_seg[mi], x_nchw) \
              + b_seg[mi][:, 0][None, :, None, None]
        cls_map = jnp.einsum('kc,bchw->bkhw', w_cls[mi], x_nchw)
        cls = cls_map.mean(axis=(2, 3)) + b_cls[mi][:, 0][None, :]
        seg_list.append(seg)
        cls_list.append(cls)
    mask_logits_ensemble = jnp.stack(seg_list).mean(axis=0)
    logits_ensemble = jnp.stack(cls_list).mean(axis=0)
    logits_cls = mask_logits_ensemble.sum(axis=(2, 3)) / (
        mask_nchw.sum(axis=(2, 3)) + 1.0)
    pred = jnp.argmax(logits_cls, axis=1)
    return mask_logits_ensemble, logits_ensemble, pred


if __name__ == "__main__":
    key = jax.random.PRNGKey(0)
    kx, km, k1, k2, k3, k4 = jax.random.split(key, 6)

    x = jax.random.normal(kx, (B, C_IN, H, W), jnp.float32)
    mask = (jax.random.uniform(km, (B, 1, H, W)) > 0.5).astype(jnp.float32)

    # deterministic synthetic per-model weights
    w_seg = 0.1 * jax.random.normal(k1, (N_MODELS, K, C_IN), jnp.float32)
    b_seg = 0.1 * jax.random.normal(k2, (N_MODELS, K, 1), jnp.float32)
    w_cls = 0.1 * jax.random.normal(k3, (N_MODELS, K, C_IN), jnp.float32)
    b_cls = 0.1 * jax.random.normal(k4, (N_MODELS, K, 1), jnp.float32)

    # pack once (weights are static); the forward then takes 3 operands
    wpack = pack_weights(w_seg, b_seg, w_cls, b_cls)

    seg_k, cls_k, pred_k = jax.block_until_ready(
        ensemble_forward(x, mask, wpack))

    seg_r, cls_r, pred_r = reference(x, mask, w_seg, b_seg, w_cls, b_cls)

    assert jnp.allclose(seg_k, seg_r, atol=1e-4), "seg logits mismatch"
    assert jnp.allclose(cls_k, cls_r, atol=1e-4), "cls logits mismatch"
    assert jnp.array_equal(pred_k, pred_r.astype(jnp.int32)), "pred mismatch"

    print("KERNEL_OK")
</pallas_src>

<mosaic_0001>
module attributes {stable_mosaic.version = 11 : i64} {
  func.func @ensemble_kernel(%arg0: memref<8x256xf32, #tpu.memory_space<vmem>>, %arg1: memref<2x256xf32, #tpu.memory_space<vmem>>, %arg2: memref<3x16x5xf32, #tpu.memory_space<vmem>>, %arg3: memref<16x256xf32, #tpu.memory_space<vmem>>, %arg4: memref<8x128xf32, #tpu.memory_space<vmem>>) attributes {dimension_semantics = [], scalar_prefetch = 0 : i64, scratch_operands = 0 : i64, tpu.core_type = #tpu.core_type<tc>} {
    %c0 = arith.constant 0 : index
    %c0_0 = arith.constant 0 : index
    %c0_1 = arith.constant 0 : index
    %0 = vector.load %arg2[%c0, %c0_0, %c0_1] : memref<3x16x5xf32, #tpu.memory_space<vmem>>, vector<1x16x5xf32>
    %1 = vector.shape_cast %0 : vector<1x16x5xf32> to vector<16x5xf32>
    %c1 = arith.constant 1 : index
    %c0_2 = arith.constant 0 : index
    %c0_3 = arith.constant 0 : index
    %2 = vector.load %arg2[%c1, %c0_2, %c0_3] : memref<3x16x5xf32, #tpu.memory_space<vmem>>, vector<1x16x5xf32>
    %3 = vector.shape_cast %2 : vector<1x16x5xf32> to vector<16x5xf32>
    %4 = arith.addf %1, %3 : vector<16x5xf32>
    %c2 = arith.constant 2 : index
    %c0_4 = arith.constant 0 : index
    %c0_5 = arith.constant 0 : index
    %5 = vector.load %arg2[%c2, %c0_4, %c0_5] : memref<3x16x5xf32, #tpu.memory_space<vmem>>, vector<1x16x5xf32>
    %6 = vector.shape_cast %5 : vector<1x16x5xf32> to vector<16x5xf32>
    %7 = arith.addf %4, %6 : vector<16x5xf32>
    %cst = arith.constant 0.333333343 : f32
    %8 = vector.broadcast %cst : f32 to vector<16x5xf32>
    %9 = arith.mulf %7, %8 : vector<16x5xf32>
    %10 = vector.extract_strided_slice %9 {offsets = [0, 0], sizes = [8, 4], strides = [1, 1]} : vector<16x5xf32> to vector<8x4xf32>
    %11 = vector.extract_strided_slice %9 {offsets = [0, 4], sizes = [8, 1], strides = [1, 1]} : vector<16x5xf32> to vector<8x1xf32>
    %12 = vector.extract_strided_slice %9 {offsets = [8, 0], sizes = [8, 4], strides = [1, 1]} : vector<16x5xf32> to vector<8x4xf32>
    %13 = vector.extract_strided_slice %9 {offsets = [8, 4], sizes = [8, 1], strides = [1, 1]} : vector<16x5xf32> to vector<8x1xf32>
    %c0_6 = arith.constant 0 : index
    %c0_7 = arith.constant 0 : index
    %14 = vector.load %arg0[%c0_6, %c0_7] : memref<8x256xf32, #tpu.memory_space<vmem>>, vector<4x256xf32>
    %15 = vector.extract_strided_slice %10 {offsets = [0, 0], sizes = [8, 1], strides = [1, 1]} : vector<8x4xf32> to vector<8x1xf32>
    %16 = vector.extract_strided_slice %14 {offsets = [0, 0], sizes = [1, 256], strides = [1, 1]} : vector<4x256xf32> to vector<1x256xf32>
    %17 = vector.broadcast %15 : vector<8x1xf32> to vector<8x256xf32>
    %18 = vector.broadcast %16 : vector<1x256xf32> to vector<8x256xf32>
    %19 = arith.mulf %17, %18 : vector<8x256xf32>
    %20 = vector.extract_strided_slice %10 {offsets = [0, 1], sizes = [8, 1], strides = [1, 1]} : vector<8x4xf32> to vector<8x1xf32>
    %21 = vector.extract_strided_slice %14 {offsets = [1, 0], sizes = [1, 256], strides = [1, 1]} : vector<4x256xf32> to vector<1x256xf32>
    %22 = vector.broadcast %20 : vector<8x1xf32> to vector<8x256xf32>
    %23 = vector.broadcast %21 : vector<1x256xf32> to vector<8x256xf32>
    %24 = arith.mulf %22, %23 : vector<8x256xf32>
    %25 = arith.addf %19, %24 : vector<8x256xf32>
    %26 = vector.extract_strided_slice %10 {offsets = [0, 2], sizes = [8, 1], strides = [1, 1]} : vector<8x4xf32> to vector<8x1xf32>
    %27 = vector.extract_strided_slice %14 {offsets = [2, 0], sizes = [1, 256], strides = [1, 1]} : vector<4x256xf32> to vector<1x256xf32>
    %28 = vector.broadcast %26 : vector<8x1xf32> to vector<8x256xf32>
    %29 = vector.broadcast %27 : vector<1x256xf32> to vector<8x256xf32>
    %30 = arith.mulf %28, %29 : vector<8x256xf32>
    %31 = arith.addf %25, %30 : vector<8x256xf32>
    %32 = vector.extract_strided_slice %10 {offsets = [0, 3], sizes = [8, 1], strides = [1, 1]} : vector<8x4xf32> to vector<8x1xf32>
    %33 = vector.extract_strided_slice %14 {offsets = [3, 0], sizes = [1, 256], strides = [1, 1]} : vector<4x256xf32> to vector<1x256xf32>
    %34 = vector.broadcast %32 : vector<8x1xf32> to vector<8x256xf32>
    %35 = vector.broadcast %33 : vector<1x256xf32> to vector<8x256xf32>
    %36 = arith.mulf %34, %35 : vector<8x256xf32>
    %37 = arith.addf %31, %36 : vector<8x256xf32>
    %38 = vector.broadcast %11 : vector<8x1xf32> to vector<8x256xf32>
    %39 = arith.addf %37, %38 : vector<8x256xf32>
    %c0_8 = arith.constant 0 : index
    %c0_9 = arith.constant 0 : index
    %40 = vector.load %arg3[%c0_8, %c0_9] : memref<16x256xf32, #tpu.memory_space<vmem>>, vector<8x256xf32>
    tpu.vector_store %arg3[%c0_8, %c0_9], %39 {strides = array<i32>} : memref<16x256xf32, #tpu.memory_space<vmem>>, vector<8x256xf32>,
    %cst_10 = arith.constant dense<0.000000e+00> : vector<4xf32>
    %41 = vector.multi_reduction <add>, %14, %cst_10 [1] : vector<4x256xf32> to vector<4xf32>
    %42 = vector.shape_cast %41 : vector<4xf32> to vector<4x1xf32>
    %c0_11 = arith.constant 0 : index
    %c0_12 = arith.constant 0 : index
    %43 = vector.load %arg1[%c0_11, %c0_12] : memref<2x256xf32, #tpu.memory_space<vmem>>, vector<1x256xf32>
    %cst_13 = arith.constant dense<0.000000e+00> : vector<1xf32>
    %44 = vector.multi_reduction <add>, %43, %cst_13 [1] : vector<1x256xf32> to vector<1xf32>
    %45 = vector.shape_cast %44 : vector<1xf32> to vector<1x1xf32>
    %c4 = arith.constant 4 : index
    %c0_14 = arith.constant 0 : index
    %46 = vector.load %arg0[%c4, %c0_14] : memref<8x256xf32, #tpu.memory_space<vmem>>, vector<4x256xf32>
    %47 = vector.extract_strided_slice %10 {offsets = [0, 0], sizes = [8, 1], strides = [1, 1]} : vector<8x4xf32> to vector<8x1xf32>
    %48 = vector.extract_strided_slice %46 {offsets = [0, 0], sizes = [1, 256], strides = [1, 1]} : vector<4x256xf32> to vector<1x256xf32>
    %49 = vector.broadcast %47 : vector<8x1xf32> to vector<8x256xf32>
    %50 = vector.broadcast %48 : vector<1x256xf32> to vector<8x256xf32>
    %51 = arith.mulf %49, %50 : vector<8x256xf32>
    %52 = vector.extract_strided_slice %10 {offsets = [0, 1], sizes = [8, 1], strides = [1, 1]} : vector<8x4xf32> to vector<8x1xf32>
    %53 = vector.extract_strided_slice %46 {offsets = [1, 0], sizes = [1, 256], strides = [1, 1]} : vector<4x256xf32> to vector<1x256xf32>
    %54 = vector.broadcast %52 : vector<8x1xf32> to vector<8x256xf32>
    %55 = vector.broadcast %53 : vector<1x256xf32> to vector<8x256xf32>
    %56 = arith.mulf %54, %55 : vector<8x256xf32>
    %57 = arith.addf %51, %56 : vector<8x256xf32>
    %58 = vector.extract_strided_slice %10 {offsets = [0, 2], sizes = [8, 1], strides = [1, 1]} : vector<8x4xf32> to vector<8x1xf32>
    %59 = vector.extract_strided_slice %46 {offsets = [2, 0], sizes = [1, 256], strides = [1, 1]} : vector<4x256xf32> to vector<1x256xf32>
    %60 = vector.broadcast %58 : vector<8x1xf32> to vector<8x256xf32>
    %61 = vector.broadcast %59 : vector<1x256xf32> to vector<8x256xf32>
    %62 = arith.mulf %60, %61 : vector<8x256xf32>
    %63 = arith.addf %57, %62 : vector<8x256xf32>
    %64 = vector.extract_strided_slice %10 {offsets = [0, 3], sizes = [8, 1], strides = [1, 1]} : vector<8x4xf32> to vector<8x1xf32>
    %65 = vector.extract_strided_slice %46 {offsets = [3, 0], sizes = [1, 256], strides = [1, 1]} : vector<4x256xf32> to vector<1x256xf32>
    %66 = vector.broadcast %64 : vector<8x1xf32> to vector<8x256xf32>
    %67 = vector.broadcast %65 : vector<1x256xf32> to vector<8x256xf32>
    %68 = arith.mulf %66, %67 : vector<8x256xf32>
    %69 = arith.addf %63, %68 : vector<8x256xf32>
    %70 = vector.broadcast %11 : vector<8x1xf32> to vector<8x256xf32>
    %71 = arith.addf %69, %70 : vector<8x256xf32>
    %c8 = arith.constant 8 : index
    %c0_15 = arith.constant 0 : index
    %72 = vector.load %arg3[%c8, %c0_15] : memref<16x256xf32, #tpu.memory_space<vmem>>, vector<8x256xf32>
    tpu.vector_store %arg3[%c8, %c0_15], %71 {strides = array<i32>} : memref<16x256xf32, #tpu.memory_space<vmem>>, vector<8x256xf32>,
    %cst_16 = arith.constant dense<0.000000e+00> : vector<4xf32>
    %73 = vector.multi_reduction <add>, %46, %cst_16 [1] : vector<4x256xf32> to vector<4xf32>
    %74 = vector.shape_cast %73 : vector<4xf32> to vector<4x1xf32>
    %c1_17 = arith.constant 1 : index
    %c0_18 = arith.constant 0 : index
    %75 = vector.load %arg1[%c1_17, %c0_18] : memref<2x256xf32, #tpu.memory_space<vmem>>, vector<1x256xf32>
    %cst_19 = arith.constant dense<0.000000e+00> : vector<1xf32>
    %76 = vector.multi_reduction <add>, %75, %cst_19 [1] : vector<1x256xf32> to vector<1xf32>
    %77 = vector.shape_cast %76 : vector<1xf32> to vector<1x1xf32>
    %78 = tpu.concatenate %42, %74 in 1 : vector<4x1xf32>, vector<4x1xf32> -> vector<4x2xf32>
    %79 = tpu.concatenate %45, %77 in 1 : vector<1x1xf32>, vector<1x1xf32> -> vector<1x2xf32>
    %80 = vector.extract_strided_slice %12 {offsets = [0, 0], sizes = [8, 1], strides = [1, 1]} : vector<8x4xf32> to vector<8x1xf32>
    %81 = vector.extract_strided_slice %78 {offsets = [0, 0], sizes = [1, 2], strides = [1, 1]} : vector<4x2xf32> to vector<1x2xf32>
    %82 = vector.broadcast %80 : vector<8x1xf32> to vector<8x2xf32>
    %83 = vector.broadcast %81 : vector<1x2xf32> to vector<8x2xf32>
    %84 = arith.mulf %82, %83 : vector<8x2xf32>
    %85 = vector.extract_strided_slice %12 {offsets = [0, 1], sizes = [8, 1], strides = [1, 1]} : vector<8x4xf32> to vector<8x1xf32>
    %86 = vector.extract_strided_slice %78 {offsets = [1, 0], sizes = [1, 2], strides = [1, 1]} : vector<4x2xf32> to vector<1x2xf32>
    %87 = vector.broadcast %85 : vector<8x1xf32> to vector<8x2xf32>
    %88 = vector.broadcast %86 : vector<1x2xf32> to vector<8x2xf32>
    %89 = arith.mulf %87, %88 : vector<8x2xf32>
    %90 = arith.addf %84, %89 : vector<8x2xf32>
    %91 = vector.extract_strided_slice %12 {offsets = [0, 2], sizes = [8, 1], strides = [1, 1]} : vector<8x4xf32> to vector<8x1xf32>
    %92 = vector.extract_strided_slice %78 {offsets = [2, 0], sizes = [1, 2], strides = [1, 1]} : vector<4x2xf32> to vector<1x2xf32>
    %93 = vector.broadcast %91 : vector<8x1xf32> to vector<8x2xf32>
    %94 = vector.broadcast %92 : vector<1x2xf32> to vector<8x2xf32>
    %95 = arith.mulf %93, %94 : vector<8x2xf32>
    %96 = arith.addf %90, %95 : vector<8x2xf32>
    %97 = vector.extract_strided_slice %12 {offsets = [0, 3], sizes = [8, 1], strides = [1, 1]} : vector<8x4xf32> to vector<8x1xf32>
    %98 = vector.extract_strided_slice %78 {offsets = [3, 0], sizes = [1, 2], strides = [1, 1]} : vector<4x2xf32> to vector<1x2xf32>
    %99 = vector.broadcast %97 : vector<8x1xf32> to vector<8x2xf32>
    %100 = vector.broadcast %98 : vector<1x2xf32> to vector<8x2xf32>
    %101 = arith.mulf %99, %100 : vector<8x2xf32>
    %102 = arith.addf %96, %101 : vector<8x2xf32>
    %cst_20 = arith.constant 3.906250e-03 : f32
    %103 = vector.broadcast %cst_20 : f32 to vector<8x2xf32>
    %104 = arith.mulf %102, %103 : vector<8x2xf32>
    %105 = vector.broadcast %13 : vector<8x1xf32> to vector<8x2xf32>
    %106 = arith.addf %104, %105 : vector<8x2xf32>
    %107 = vector.extract_strided_slice %10 {offsets = [0, 0], sizes = [8, 1], strides = [1, 1]} : vector<8x4xf32> to vector<8x1xf32>
    %108 = vector.extract_strided_slice %78 {offsets = [0, 0], sizes = [1, 2], strides = [1, 1]} : vector<4x2xf32> to vector<1x2xf32>
    %109 = vector.broadcast %107 : vector<8x1xf32> to vector<8x2xf32>
    %110 = vector.broadcast %108 : vector<1x2xf32> to vector<8x2xf32>
    %111 = arith.mulf %109, %110 : vector<8x2xf32>
    %112 = vector.extract_strided_slice %10 {offsets = [0, 1], sizes = [8, 1], strides = [1, 1]} : vector<8x4xf32> to vector<8x1xf32>
    %113 = vector.extract_strided_slice %78 {offsets = [1, 0], sizes = [1, 2], strides = [1, 1]} : vector<4x2xf32> to vector<1x2xf32>
    %114 = vector.broadcast %112 : vector<8x1xf32> to vector<8x2xf32>
    %115 = vector.broadcast %113 : vector<1x2xf32> to vector<8x2xf32>
    %116 = arith.mulf %114, %115 : vector<8x2xf32>
    %117 = arith.addf %111, %116 : vector<8x2xf32>
    %118 = vector.extract_strided_slice %10 {offsets = [0, 2], sizes = [8, 1], strides = [1, 1]} : vector<8x4xf32> to vector<8x1xf32>
    %119 = vector.extract_strided_slice %78 {offsets = [2, 0], sizes = [1, 2], strides = [1, 1]} : vector<4x2xf32> to vector<1x2xf32>
    %120 = vector.broadcast %118 : vector<8x1xf32> to vector<8x2xf32>
    %121 = vector.broadcast %119 : vector<1x2xf32> to vector<8x2xf32>
    %122 = arith.mulf %120, %121 : vector<8x2xf32>
    %123 = arith.addf %117, %122 : vector<8x2xf32>
    %124 = vector.extract_strided_slice %10 {offsets = [0, 3], sizes = [8, 1], strides = [1, 1]} : vector<8x4xf32> to vector<8x1xf32>
    %125 = vector.extract_strided_slice %78 {offsets = [3, 0], sizes = [1, 2], strides = [1, 1]} : vector<4x2xf32> to vector<1x2xf32>
    %126 = vector.broadcast %124 : vector<8x1xf32> to vector<8x2xf32>
    %127 = vector.broadcast %125 : vector<1x2xf32> to vector<8x2xf32>
    %128 = arith.mulf %126, %127 : vector<8x2xf32>
    %129 = arith.addf %123, %128 : vector<8x2xf32>
    %cst_21 = arith.constant 2.560000e+02 : f32
    %130 = vector.broadcast %cst_21 : f32 to vector<8x1xf32>
    %131 = arith.mulf %130, %11 : vector<8x1xf32>
    %132 = vector.broadcast %131 : vector<8x1xf32> to vector<8x2xf32>
    %133 = arith.addf %129, %132 : vector<8x2xf32>
    %cst_22 = arith.constant 1.000000e+00 : f32
    %134 = vector.broadcast %cst_22 : f32 to vector<1x2xf32>
    %135 = arith.addf %79, %134 : vector<1x2xf32>
    %136 = vector.broadcast %135 : vector<1x2xf32> to vector<8x2xf32>
    %137 = arith.divf %133, %136 : vector<8x2xf32>
    %138 = tpu.iota {dimensions = array<i32: 0>} : vector<8x2xi32>
    %cst_23 = arith.constant dense<0xFF800000> : vector<2xf32>
    %139 = vector.multi_reduction <maximumf>, %137, %cst_23 [0] : vector<8x2xf32> to vector<2xf32>
    %140 = vector.shape_cast %139 : vector<2xf32> to vector<1x2xf32>
    %141 = vector.broadcast %140 : vector<1x2xf32> to vector<8x2xf32>
    %142 = arith.cmpf oeq, %137, %141 : vector<8x2xf32>
    %c8_i32 = arith.constant 8 : i32
    %143 = vector.broadcast %c8_i32 : i32 to vector<8x2xi32>
    %144 = arith.select %142, %138, %143 : vector<8x2xi1>, vector<8x2xi32>
    %cst_24 = arith.constant dense<2147483647> : vector<2xi32>
    %145 = vector.multi_reduction <minsi>, %144, %cst_24 [0] : vector<8x2xi32> to vector<2xi32>
    %146 = vector.shape_cast %145 : vector<2xi32> to vector<1x2xi32>
    %cst_25 = arith.constant 0.000000e+00 : f32
    %147 = vector.broadcast %cst_25 : f32 to vector<8x128xf32>
    %c0_26 = arith.constant 0 : index
    %c0_27 = arith.constant 0 : index
    %148 = vector.load %arg4[%c0_26, %c0_27] : memref<8x128xf32, #tpu.memory_space<vmem>>, vector<8x128xf32>
    tpu.vector_store %arg4[%c0_26, %c0_27], %147 {strides = array<i32>} : memref<8x128xf32, #tpu.memory_space<vmem>>, vector<8x128xf32>,
    %c0_28 = arith.constant 0 : index
    %c0_29 = arith.constant 0 : index
    %149 = vector.load %arg4[%c0_28, %c0_29] : memref<8x128xf32, #tpu.memory_space<vmem>>, vector<8x2xf32>
    tpu.vector_store %arg4[%c0_28, %c0_29], %106 {strides = array<i32>} : memref<8x128xf32, #tpu.memory_space<vmem>>, vector<8x2xf32>,
    %150 = arith.sitofp %146 : vector<1x2xi32> to vector<1x2xf32>
    %151 = vector.shape_cast %150 : vector<1x2xf32> to vector<1x2xf32>
    %152 = vector.broadcast %151 : vector<1x2xf32> to vector<8x2xf32>
    %c0_30 = arith.constant 0 : index
    %c2_31 = arith.constant 2 : index
    %153 = vector.load %arg4[%c0_30, %c2_31] : memref<8x128xf32, #tpu.memory_space<vmem>>, vector<8x2xf32>
    tpu.vector_store %arg4[%c0_30, %c2_31], %152 {strides = array<i32>} : memref<8x128xf32, #tpu.memory_space<vmem>>, vector<8x2xf32>,
    return
  }
}

</mosaic_0001>

<bundles_post_ra>
// kernel: ensemble_forward.1
= control target key start
LH: loop header
LB: loop body
LE: loop exit
PB: predicated region body
PF: predicated region fallthrough
CT: control target
= control target key end

     0   :  { %vm179_vm0 = vcmask 1047556   ;;  %vm103_vm1 = vcmask 1043456   ;;  %v37_v0 = vlaneseq  ;;  %v340_v15 = vmov 1   ;;  %s346_s22 = smov 2   ;;  %s514_s0 = inlined_call_operand.vmem [shape: f32[8,256], index: 0, kind: input, shape index: {}]   ;;  %s515_s1 = inlined_call_operand.vmem [shape: f32[2,256], index: 1, kind: input, shape index: {}]   ;;  %s516_s2 = inlined_call_operand.vmem [shape: f32[3,16,5], index: 2, kind: input, shape index: {}]   ;;  %s517_s4 = inlined_call_operand.vmem [shape: f32[8,128], index: 4, kind: output, shape index: {1}]   ;;  %s518_s3 = inlined_call_operand.vmem [shape: f32[16,256], index: 3, kind: output, shape index: {0}]  }
   0x1   :  { %v375_v1 = vld [vmem:[%s514_s0] sm:$0xf0]  ;;  %v380_v2 = vld [vmem:[%s514_s0 + $0x8] sm:$0xf0]  ;;  %v385_v3 = vld [vmem:[%s514_s0] sm:$0xf]  ;;  %328 = vset.pattern.permute.xlu1 %v340_v15 }
   0x2   :  { %v180_v4 = vsel %vm179_vm0, %v375_v1, 0.0  ;;  %v181_v5 = vsel %vm179_vm0, %v380_v2, 0.0  ;;  %v392_v6 = vld [vmem:[%s514_s0 + $0x8] sm:$0xf]  ;;  %v104_v7 = vsel %vm103_vm1, %v385_v3, 0.0  ;;  %v395_v8 = vshrl.u32 %v37_v0, 7 }
   0x3   :  { %v182_v9 = vadd.f32 %v181_v5, %v180_v4  ;;  %v105_v10 = vsel %vm103_vm1, %v392_v6, 0.0  ;;  %v109_v11 = vld [vmem:[%s515_s1] ss:$2 sm:$0x3]  ;;  %vm121_vm2 = vcmask 1040384   ;;  %v341_v21 = vmov 0  }
   0x4   :  { %v402_v12 = vsub.s32 0, %v395_v8  ;;  %v405_v13 = vsub.s32 1, %v395_v8  ;;  %v319_v14 = vld [vmem:[%s515_s1 + $0x1] ss:$2 sm:$0x3]  ;;  %v106_v16 = vadd.f32 %v105_v10, %v104_v7  ;;  %327 = vset.pattern.permute.xlu0 %v341_v21  ;;  %v315_v29 = vld [vmem:[%s516_s2 + $0x10] sm:$0xff] }
   0x5   :  { %183 = vadd.xlane.f32.xlu1 %v182_v9  ;;  %v16_v28 = vld [vmem:[%s516_s2] sm:$0xff]  ;;  %v17_v34 = vld [vmem:[%s516_s2 + $0x8] sm:$0xff]  ;;  %v316_v35 = vld [vmem:[%s516_s2 + $0x18] sm:$0xff]  ;;  %v342_v36 = vmov 2   ;;  %v343_v39 = vmov 3   ;;  %v344_v42 = vmov 4  }
   0x6   :  { %v114_v17 = vrot.slane %v109_v11, %v402_v12  ;;  %v118_v18 = vrot.slane %v109_v11, %v405_v13  ;;  %v191_v19 = vrot.slane %v319_v14, %v402_v12  ;;  %v195_v20 = vrot.slane %v319_v14, %v405_v13  ;;  %v317_v31 = vld [vmem:[%s516_s2 + $0x20] sm:$0xff]  ;;  %v318_v38 = vld [vmem:[%s516_s2 + $0x28] sm:$0xff] }
   0x7   :  { %v21_v30 = vadd.f32 %v315_v29, %v16_v28  ;;  %v22_v37 = vadd.f32 %v316_v35, %v17_v34  ;;  %v345_v44 = vmov 0.0   ;;  %vm206_vm3 = vcmask 7168  }
   0x8   :  { %v122_v22 = vsel %vm121_vm2, %v114_v17, 0.0  ;;  %v123_v23 = vsel %vm121_vm2, %v118_v18, 0.0  ;;  %v198_v24 = vsel %vm121_vm2, %v191_v19, 0.0  ;;  %v199_v25 = vsel %vm121_vm2, %v195_v20, 0.0  ;;  %298 = vst [vmem:[%s517_s4] sm:$0xff] %v345_v44 }
   0x9   :  { %107 = vadd.xlane.f32.xlu1 %v106_v16  ;;  %v124_v26 = vadd.f32 %v123_v23, %v122_v22  ;;  %v200_v27 = vadd.f32 %v199_v25, %v198_v24  ;;  %v26_v32 = vadd.f32 %v317_v31, %v21_v30  ;;  %v27_v40 = vadd.f32 %v318_v38, %v22_v37 }
   0xa   :  { %v439_v56 = vsub.s32 2, %v395_v8  ;;  %v443_v58 = vsub.s32 3, %v395_v8  ;;  %v131_v14 = vsub.s32 4, %v395_v8  ;;  %v141_v16 = vsub.s32 5, %v395_v8 }
   0xb   :  { %125 = vadd.xlane.f32.xlu0 %v124_v26  ;;  %v28_v33 = vmul.f32 0.33333334, %v26_v32  ;;  %v29_v43 = vmul.f32 0.33333334, %v27_v40  ;;  %v153_v20 = vsub.s32 6, %v395_v8  ;;  %vm278_vm4 = vcmask 15360  }
   0xc   :  { %v44_v22 = vrot.slane %v392_v6, %v402_v12  ;;  %v132_v23 = vrot.slane %v375_v1, %v131_v14  ;;  %v58_v25 = vrot.slane %v392_v6, %v405_v13  ;;  %v142_v26 = vrot.slane %v375_v1, %v141_v16 }
   0xd   :  { %v262_v41 = vmul.f32 256.0, %v28_v33  ;;  %v146_v28 = vrot.slane %v380_v2, %v141_v16  ;;  %v54_v29 = vrot.slane %v385_v3, %v405_v13  ;;  %v165_v30 = vsub.s32 7, %v395_v8 }
   0xe   :  { %v74_v32 = vrot.slane %v392_v6, %v439_v56  ;;  %v158_v34 = vrot.slane %v380_v2, %v153_v20  ;;  %v86_v40 = vrot.slane %v385_v3, %v443_v58  ;;  %vm305_vm9 = vcmask 31760  }
   0xf   :  { %201 = vadd.xlane.f32.xlu0 %v200_v27  ;;  %v136_v27 = vrot.slane %v380_v2, %v131_v14 }
  0x1a   :  { %48 = vperm.xlu1 %328, %v28_v33  }
  0x1e   :  { %329 = vset.pattern.permute.xlu1 %v342_v36 }
  0x1f   :  { %64 = vperm.xlu1 %329, %v28_v33  }
  0x23   :  { %330 = vset.pattern.permute.xlu1 %v343_v39 }
  0x24   :  { %80 = vperm.xlu1 %330, %v28_v33  }
  0x25   :  { %34 = vperm.xlu0 %327, %v28_v33  }
  0x28   :  { %331 = vset.pattern.permute.xlu1 %v344_v42 }
  0x29   :  { %265 = vperm.xlu1 %331, %v262_v41   ;;  %336 = vset.pattern.permute.xlu0 %v344_v42 }
  0x2a   :  { %251 = vperm.xlu0 %336, %v29_v43  }
  0x2d   :  { %332 = vset.pattern.permute.xlu1 %v341_v21  ;;  %v40_v21 = vrot.slane %v385_v3, %v402_v12 }
  0x2e   :  { %211 = vperm.xlu1 %332, %v29_v43  }
  0x32   :  { %333 = vset.pattern.permute.xlu1 %v340_v15 }
  0x33   :  { %220 = vperm.xlu1 %333, %v29_v43  }
  0x37   :  { %334 = vset.pattern.permute.xlu1 %v342_v36  ;;  %v70_v36 = vrot.slane %v385_v3, %v439_v56 }
  0x38   :  { %230 = vperm.xlu1 %334, %v29_v43  }
  0x3c   :  { %335 = vset.pattern.permute.xlu1 %v343_v39 }
  0x3d   :  { %240 = vperm.xlu1 %335, %v29_v43  }
  0x41   :  { %337 = vset.pattern.permute.xlu1 %v344_v42 }
  0x42   :  { %96 = vperm.xlu1 %337, %v28_v33   ;;  %v154_v33 = vrot.slane %v375_v1, %v153_v20 }
  0x92   :  { %v184_v45 = vpop.xlane.xlu1 %183 }
  0x93   :  { %v204_v49 = vrot.slane %v184_v45, 4 }
  0x96   :  { %v108_v46 = vpop.xlane.xlu1 %107 }
  0x97   :  { %v207_v54 = vsel %vm206_vm3, %v108_v46, %v204_v49  ;;  %v166_v46 = vrot.slane %v375_v1, %v165_v30  ;;  %v170_v49 = vrot.slane %v380_v2, %v165_v30 }
  0x98   :  { %v126_v47 = vpop.xlane.xlu0 %125  ;;  %v226_v57 = vrot.slane %v207_v54, %v405_v13  ;;  %v217_v59 = vrot.slane %v207_v54, %v402_v12  ;;  %v236_v62 = vrot.slane %v207_v54, %v439_v56  ;;  %v450_v4 = vrot.slane %v207_v54, %v443_v58 }
  0x99   :  { %v90_v13 = vrot.slane %v392_v6, %v443_v58 }
  0x9a   :  { %v49_v48 = vpop.permute.xlu1 %48 }
  0x9b   :  { %v256_v0 = vmul.f32 %v226_v57, %v49_v48  ;;  %v59_v43 = vmul.f32 %v54_v29, %v49_v48  ;;  %v60_v44 = vmul.f32 %v58_v25, %v49_v48  ;;  %v147_v45 = vmul.f32 %v142_v26, %v49_v48 }
  0x9c   :  { %v202_v50 = vpop.xlane.xlu0 %201 }
  0x9d   :  { %v208_v51 = vsel %vm206_vm3, %v126_v47, %v202_v50  ;;  %v148_v47 = vmul.f32 %v146_v28, %v49_v48 }
  0x9e   :  { %v269_v52 = vadd.f32 1.0, %v208_v51  ;;  %v435_v53 = vpop.permute.xlu1 %64 }
  0x9f   :  { %v258_v7 = vmul.f32 %v236_v62, %v435_v53  ;;  %v75_v54 = vmul.f32 %v70_v36, %v435_v53  ;;  %v160_v1 = vmul.f32 %v158_v34, %v435_v53 }
  0xa0   :  { %v273_v55 = vrot.slane %v269_v52, %v402_v12 }
  0xa2   :  { %338 = vrcp.f32 %v273_v55 }
  0xa3   :  { %v446_v60 = vpop.permute.xlu1 %80 }
  0xa4   :  { %v35_v61 = vpop.permute.xlu0 %34  ;;  %v260_v11 = vmul.f32 %v450_v4, %v446_v60  ;;  %v91_v2 = vmul.f32 %v86_v40, %v446_v60  ;;  %v92_v48 = vmul.f32 %v90_v13, %v446_v60 }
  0xa5   :  { %v255_v63 = vmul.f32 %v217_v59, %v35_v61  ;;  %v45_v37 = vmul.f32 %v40_v21, %v35_v61  ;;  %v46_v38 = vmul.f32 %v44_v22, %v35_v61  ;;  %v137_v39 = vmul.f32 %v132_v23, %v35_v61 }
  0xa6   :  { %v138_v41 = vmul.f32 %v136_v27, %v35_v61 }
  0xa7   :  { %v257_v5 = vadd.f32 %v256_v0, %v255_v63  ;;  %v61_v55 = vadd.f32 %v59_v43, %v45_v37  ;;  %v62_v6 = vadd.f32 %v60_v44, %v46_v38  ;;  %v149_v56 = vadd.f32 %v147_v45, %v137_v39 }
  0xa8   :  { %v266_v9 = vpop.permute.xlu1 %265  ;;  %v150_v63 = vadd.f32 %v148_v47, %v138_v41  ;;  %v76_v0 = vmul.f32 %v74_v32, %v435_v53 }
  0xa9   :  { %v259_v10 = vadd.f32 %v258_v7, %v257_v5  ;;  %v159_v5 = vmul.f32 %v154_v33, %v435_v53  ;;  %v252_v23 = vpop.permute.xlu0 %251 }
  0xaa   :  { %v78_v14 = vadd.f32 %v76_v0, %v62_v6 }
  0xab   :  { %v261_v15 = vadd.f32 %v260_v11, %v259_v10  ;;  %v172_v10 = vmul.f32 %v170_v49, %v446_v60 }
  0xac   :  { %v339_v19 = vpop.eup %338  ;;  %v94_v20 = vadd.f32 %v92_v48, %v78_v14 }
  0xad   :  { %v212_v17 = vpop.permute.xlu1 %211  ;;  %v268_v18 = vadd.f32 %v266_v9, %v261_v15 }
  0xae   :  { %v218_v58 = vmul.f32 %v217_v59, %v212_v17  ;;  %v161_v59 = vadd.f32 %v159_v5, %v149_v56 }
  0xaf   :  { %v275_v24 = vmul.f32 %v339_v19, %v268_v18  ;;  %v162_v18 = vadd.f32 %v160_v1, %v150_v63 }
  0xb1   :  { %v279_v31 = vsel %vm278_vm4, %v275_v24, -inf }
  0xb2   :  { %v221_v12 = vpop.permute.xlu1 %220  ;;  %v280_v35 = vrot.slane %v279_v31, 4 }
  0xb3   :  { %v227_v51 = vmul.f32 %v226_v57, %v221_v12  ;;  %v171_v57 = vmul.f32 %v166_v46, %v446_v60  ;;  %v174_v60 = vadd.f32 %v172_v10, %v162_v18 }
  0xb4   :  { %v281_v42 = vmax.f32 %v279_v31, %v280_v35 }
  0xb5   :  { %v228_v9 = vadd.f32 %v227_v51, %v218_v58  ;;  %v173_v21 = vadd.f32 %v171_v57, %v161_v59 }
  0xb6   :  { %v282_v50 = vrot.slane %v281_v42, 2 }
  0xb7   :  { %v231_v52 = vpop.permute.xlu1 %230 }
  0xb8   :  { %v283_v3 = vmax.f32 %v281_v42, %v282_v50  ;;  %v237_v61 = vmul.f32 %v236_v62, %v231_v52  ;;  %v77_v62 = vadd.f32 %v75_v54, %v61_v55 }
  0xba   :  { %v284_v7 = vrot.slane %v283_v3, 1  ;;  %v238_v16 = vadd.f32 %v237_v61, %v228_v9  ;;  %v93_v22 = vadd.f32 %v91_v2, %v77_v62 }
  0xbc   :  { %v241_v11 = vpop.permute.xlu1 %240  ;;  %v285_v15 = vmax.f32 %v283_v3, %v284_v7 }
  0xbd   :  { %v247_v17 = vmul.f32 %v450_v4, %v241_v11 }
  0xbe   :  { %vm286_vm5 = vcmp.eq.f32.partialorder %v275_v24, %v285_v15 }
  0xbf   :  { %v248_v53 = vadd.f32 %v247_v17, %v238_v16  ;;  %v287_v19 = vsel %vm286_vm5, %v395_v8, 8 }
  0xc0   :  { %v288_v25 = vsel %vm278_vm4, %v287_v19, 2147483647 }
  0xc1   :  { %v97_v26 = vpop.permute.xlu1 %96  ;;  %v249_v27 = vmul.f32 0.00390625, %v248_v53  ;;  %v289_v28 = vrot.slane %v288_v25, 4 }
  0xc2   :  { %v99_v29 = vadd.f32 %v97_v26, %v93_v22  ;;  %v100_v30 = vadd.f32 %v97_v26, %v94_v20  ;;  %v175_v31 = vadd.f32 %v173_v21, %v97_v26  ;;  %v176_v12 = vadd.f32 %v174_v60, %v97_v26 }
  0xc3   :  { %v254_v4 = vadd.f32 %v252_v23, %v249_v27  ;;  %vm290_vm6 = vcmp.lt.s32.totalorder %v288_v25, %v289_v28 }
  0xc4   :  { %101 = vst [vmem:[%s518_s3] sm:$0xff] %v99_v29  ;;  %102 = vst [vmem:[%s518_s3 + $0x8] sm:$0xff] %v100_v30  ;;  %v291_v8 = vsel %vm290_vm6, %v288_v25, %v289_v28 }
  0xc5   :  { %177 = vst [vmem:[%s518_s3 + $0x10] sm:$0xff] %v175_v31  ;;  %178 = vst [vmem:[%s518_s3 + $0x18] sm:$0xff] %v176_v12  ;;  %v292_v24 = vrot.slane %v291_v8, 2 }
  0xc6   :  { %299 = vst.msk [vmem:[%s517_s4] sm:$0xff] %vm278_vm4, %v254_v4 }
  0xc7   :  { %vm293_vm7 = vcmp.lt.s32.totalorder %v291_v8, %v292_v24 }
  0xc8   :  { %v294_v32 = vsel %vm293_vm7, %v291_v8, %v292_v24 }
  0xc9   :  { %v295_v33 = vrot.slane %v294_v32, 1 }
  0xcb   :  { %vm296_vm8 = vcmp.lt.s32.totalorder %v294_v32, %v295_v33 }
  0xcc   :  { %v297_v34 = vsel %vm296_vm8, %v294_v32, %v295_v33 }
  0xcd   :  { %v300_v35 = vcvt.s32.f32 %v297_v34 }
  0xcf   :  { %302 = vrot.lane.b32.xlu1 %v300_v35, %s346_s22 }
 0x141   :  { %v303_v36 = vpop.permute.xlu1 %302 }
 0x142   :  { %306 = vst.msk [vmem:[%s517_s4] sm:$0xff] %vm305_vm9, %v303_v36 }

</bundles_post_ra>
